<compile_context>
chip_gen: v7x
topology: tpu7x:2x2x1
jax: 0.10.0
libtpu: 0.0.40
codegen_flags: <defaults>
</compile_context>

<pallas_src>
import functools

import jax
import jax.numpy as jnp
from jax.experimental import pallas as pl
from jax.experimental.pallas import tpu as pltpu


# ---------------------------------------------------------------------------
# Kernels
# ---------------------------------------------------------------------------
def _gap_partial_kernel(x_ref, psum_ref, *, tail):
    """Per-tile partial sum over the HW (lane) axis.

    grid = (N, KT), both axes parallel, so the GAP pass is split across both
    v7x TensorCores even for N == 1. Each step writes a (C, 1) partial sum;
    the tiny cross-tile combine + 2-layer MLP runs in plain JAX afterwards.
    """
    x = x_ref[0].astype(jnp.float32)                        # (C, thw)
    if tail:  # static: HW % thw != 0 -> mask garbage lanes of the last tile
        k = pl.program_id(1)
        limit = jnp.where(k == pl.num_programs(1) - 1, tail, x.shape[1])
        lane = jax.lax.broadcasted_iota(jnp.int32, x.shape, 1)
        x = jnp.where(lane < limit, x, 0.0)
    psum_ref[0, 0] = jnp.sum(x, axis=1, keepdims=True)      # (C, 1)


def _gate_kernel(x_ref, w1_ref, b1_ref, w2_ref, b2_ref, xg_ref, o_ref):
    """Local branch (per-pixel 1x1 convs) + sigmoid gating.

    grid = (N, KT), both parallel. Block is (1, C, thw) with HW on lanes, so
    stores are lane-dense on every tile except a possible tail tile. Weights
    may be bf16 (cast once in the wrapper); accumulation is f32. OOB lanes of
    a tail input tile only affect OOB output lanes, which Pallas drops.
    """
    x = x_ref[0]                                            # (C, thw), native dtype
    h = jnp.dot(w1_ref[...], x, preferred_element_type=jnp.float32)
    h = jnp.maximum(h + b1_ref[...], 0.0)                   # (Cr, thw) f32
    w2 = w2_ref[...]
    xl = jnp.dot(w2, h.astype(w2.dtype), preferred_element_type=jnp.float32)
    xl = xl + b2_ref[...]                                   # (C, thw) f32
    wei = jax.nn.sigmoid(xl + xg_ref[0])                    # f32; (C,1) lane-bcast
    # Final multiply in the input dtype: bf16 stays bf16 (v6e/v7x native VPU;
    # on v5e Mosaic decomposes it, negligible for a DMA-bound kernel).
    o_ref[0] = (x * wei.astype(x.dtype)).astype(o_ref.dtype)


# ---------------------------------------------------------------------------
# Tiling / VMEM budgets
# ---------------------------------------------------------------------------
def _tpu_vmem_budget():
    """(working budget for one tile's live set, scoped vmem_limit cap)."""
    cap = 64 << 20  # conservative default = v7x per-TensorCore physical VMEM
    try:
        info = pltpu.get_tpu_info()
        cap = int(getattr(info, "vmem_capacity_bytes", cap))
    except Exception:
        pass
    if cap >= (128 << 20):            # v5e / v6e: 128 MiB physical VMEM
        return 80 << 20, 96 << 20
    return 30 << 20, 44 << 20         # v7x: 64 MiB per TensorCore


def _pick_tile_hw(hw, c, cr, itemsize, working_budget, max_tile_hw):
    """Largest lane-dense (multiple-of-128) HW tile that fits the budget."""
    # Per-HW-column footprint: double-buffered input + output blocks (native
    # dtype) + ~4 (C,) f32 temporaries (h-add, xl, wei, product) + (Cr,) f32 h.
    col_bytes = 4 * c * itemsize + 4 * 4 * c + 4 * cr
    cap = min(max_tile_hw, working_budget // max(1, col_bytes))
    cap = max(128, (cap // 128) * 128)
    if hw <= 128:
        return hw                              # tiny feature map: full extent
    if hw <= cap and hw % 128 == 0:
        return hw                              # single exact lane-dense tile
    limit = min(cap, (hw // 128) * 128)
    for t in range(limit, 127, -128):          # prefer an exact divisor (no tail)
        if hw % t == 0:
            return t
    return limit                               # cdiv grid + masked tail tile


def _pad_inter(w1, b1, w2, sub):
    """Zero-pad the inter-channel dim to the sublane pack (result is exact)."""
    cr = w1.shape[0]
    cr_pad = ((cr + sub - 1) // sub) * sub
    if cr_pad != cr:
        pad = cr_pad - cr
        w1 = jnp.pad(w1, ((0, pad), (0, 0)))
        b1 = jnp.pad(b1, ((0, pad), (0, 0)))
        w2 = jnp.pad(w2, ((0, 0), (0, pad)))
    return w1, b1, w2, cr_pad


# ---------------------------------------------------------------------------
# Wrapper
# ---------------------------------------------------------------------------
def ms_cam_forward(x_nchw, params, *, max_tile_hw=8192):
    """x_nchw: (N, C, H, W). Returns (N, C, H, W) with MS_CAM gating applied."""
    N, C, H, W = x_nchw.shape
    HW = H * W

    # Free, contiguous reshape -- no NCHW<->NHWC transposes, no extra HBM pass.
    x = x_nchw.reshape(N, C, HW)

    # bf16 inputs: cast local-branch weights to bf16 once (tiny) so the kernel
    # never promotes the (C, thw) tile to f32 before the MXU; biases stay f32.
    wdt = jnp.bfloat16 if x.dtype == jnp.bfloat16 else jnp.float32
    sub = 16 if wdt == jnp.bfloat16 else 8
    w1l, b1l, w2l, cr_pad = _pad_inter(
        params["w1l"].astype(wdt), params["b1l"].astype(jnp.float32),
        params["w2l"].astype(wdt), sub)
    b2l = params["b2l"].astype(jnp.float32)

    working_budget, limit_cap = _tpu_vmem_budget()
    thw = _pick_tile_hw(HW, C, cr_pad, x.dtype.itemsize, working_budget,
                        max_tile_hw)
    kt = (HW + thw - 1) // thw
    tail = HW % thw                      # 0 when thw divides HW exactly
    grid = (N, kt)

    # Scoped-VMEM request derived from the actual tile (generous factors for
    # double-buffered in/out + f32 intermediates), clipped per generation.
    blk_bytes = C * thw * x.dtype.itemsize
    est = 6 * blk_bytes + 6 * C * thw * 4 + cr_pad * thw * 4 + (2 << 20)
    vmem_limit = int(max(16 << 20, min(limit_cap, est)))

    x_spec = pl.BlockSpec((1, C, thw), lambda n, k: (n, 0, k))
    const2 = lambda n, k: (0, 0)         # weights/biases stay resident in VMEM

    # -------- Phase 1: fully-parallel GAP partial sums --------
    psum = pl.pallas_call(
        functools.partial(_gap_partial_kernel, tail=tail),
        out_shape=jax.ShapeDtypeStruct((N, kt, C, 1), jnp.float32),
        grid=grid,
        in_specs=[x_spec],
        out_specs=pl.BlockSpec((1, 1, C, 1), lambda n, k: (n, k, 0, 0)),
        compiler_params=pltpu.CompilerParams(
            dimension_semantics=("parallel", "parallel"),
            vmem_limit_bytes=vmem_limit),
    )(x)

    # Tiny (O(N*C)) combine + global-branch MLP in plain JAX (f32).
    gm = jnp.sum(psum, axis=1) * (1.0 / HW)                           # (N, C, 1)
    w1g = params["w1g"].astype(jnp.float32)
    b1g = params["b1g"].astype(jnp.float32)
    w2g = params["w2g"].astype(jnp.float32)
    b2g = params["b2g"].astype(jnp.float32)
    hg = jnp.maximum(jnp.einsum("oi,nip->nop", w1g, gm) + b1g[None], 0.0)
    xg = jnp.einsum("oi,nip->nop", w2g, hg) + b2g[None]               # (N, C, 1)

    # -------- Phase 2: local branch + sigmoid gating --------
    out = pl.pallas_call(
        _gate_kernel,
        out_shape=jax.ShapeDtypeStruct((N, C, HW), x.dtype),
        grid=grid,
        in_specs=[
            x_spec,
            pl.BlockSpec((cr_pad, C), const2),    # local conv1 weight (out,in)
            pl.BlockSpec((cr_pad, 1), const2),    # local conv1 bias
            pl.BlockSpec((C, cr_pad), const2),    # local conv2 weight
            pl.BlockSpec((C, 1), const2),         # local conv2 bias
            pl.BlockSpec((1, C, 1), lambda n, k: (n, 0, 0)),  # global term
        ],
        out_specs=x_spec,
        input_output_aliases={0: 0},              # reuse x's HBM buffer if donated
        compiler_params=pltpu.CompilerParams(
            dimension_semantics=("parallel", "parallel"),
            vmem_limit_bytes=vmem_limit),
    )(x, w1l, b1l, w2l, b2l, xg)

    return out.reshape(N, C, H, W)


# ---------------------------------------------------------------------------
# Params + pure-JAX reference (mirrors the PyTorch module)
# ---------------------------------------------------------------------------
def init_params(key, channel, r=4):
    inter = max(1, int(channel // r))
    ks = jax.random.split(key, 8)
    s1 = 1.0 / jnp.sqrt(channel)
    s2 = 1.0 / jnp.sqrt(inter)
    # Weights in PyTorch conv layout (out_ch, in_ch); biases as (out_ch, 1).
    return {
        "w1l": jax.random.normal(ks[0], (inter, channel), jnp.float32) * s1,
        "b1l": jax.random.normal(ks[1], (inter, 1), jnp.float32) * s1,
        "w2l": jax.random.normal(ks[2], (channel, inter), jnp.float32) * s2,
        "b2l": jax.random.normal(ks[3], (channel, 1), jnp.float32) * s2,
        "w1g": jax.random.normal(ks[4], (inter, channel), jnp.float32) * s1,
        "b1g": jax.random.normal(ks[5], (inter, 1), jnp.float32) * s1,
        "w2g": jax.random.normal(ks[6], (channel, inter), jnp.float32) * s2,
        "b2g": jax.random.normal(ks[7], (channel, 1), jnp.float32) * s2,
    }


def ms_cam_reference(x_nchw, p):
    N, C, H, W = x_nchw.shape
    x = x_nchw.reshape(N, C, H * W).astype(jnp.float32)
    hl = jnp.maximum(jnp.einsum("oi,nip->nop", p["w1l"], x) + p["b1l"][None], 0.0)
    xl = jnp.einsum("oi,nip->nop", p["w2l"], hl) + p["b2l"][None]
    gm = jnp.mean(x, axis=2, keepdims=True)
    hg = jnp.maximum(jnp.einsum("oi,nip->nop", p["w1g"], gm) + p["b1g"][None], 0.0)
    xg = jnp.einsum("oi,nip->nop", p["w2g"], hg) + p["b2g"][None]
    out = x * jax.nn.sigmoid(xl + xg)
    return out.reshape(N, C, H, W).astype(x_nchw.dtype)


if __name__ == "__main__":
    key = jax.random.PRNGKey(0)
    kx, kp = jax.random.split(key)

    # Case 1: batch=2, channels=4, spatial=16 -> HW=256, two 128-lane tiles.
    N, C, H, W = 2, 4, 16, 16
    x = jax.random.normal(kx, (N, C, H, W), jnp.float32)
    params = init_params(kp, C, r=4)
    ref = ms_cam_reference(x, params)

    fwd = jax.jit(functools.partial(ms_cam_forward, max_tile_hw=128))
    out = jax.block_until_ready(fwd(x, params))
    assert out.shape == (N, C, H, W)
    assert jnp.allclose(out, ref, atol=1e-4, rtol=1e-4), "mismatch (case 1)"

    # Case 2: N=1, HW=144 (not a multiple of 128) -> cdiv grid + masked tail.
    N2, C2, H2, W2 = 1, 8, 12, 12
    x2 = jax.random.normal(kx, (N2, C2, H2, W2), jnp.float32)
    p2 = init_params(kp, C2, r=4)
    ref2 = ms_cam_reference(x2, p2)
    out2 = jax.block_until_ready(fwd(x2, p2))
    assert out2.shape == (N2, C2, H2, W2)
    assert jnp.allclose(out2, ref2, atol=1e-4, rtol=1e-4), "mismatch (case 2)"

    print("KERNEL_OK")
</pallas_src>

<mosaic_0001>
module attributes {stable_mosaic.version = 11 : i64} {
  func.func @_gap_partial_kernel(%arg0: i32, %arg1: i32, %arg2: memref<1x4x128xf32, #tpu.memory_space<vmem>>, %arg3: memref<1x1x4x1xf32, #tpu.memory_space<vmem>>) attributes {dimension_semantics = [#tpu.dimension_semantics<parallel>, #tpu.dimension_semantics<parallel>], iteration_bounds = array<i64: 2, 2>, scalar_prefetch = 0 : i64, scratch_operands = 0 : i64, tpu.core_type = #tpu.core_type<tc>, window_params = [{transform_indices = @transform_0, window_bounds = array<i64: 1, 4, 128>}, {transform_indices = @transform_1, window_bounds = array<i64: 1, 1, 4, 1>}]} {
    %c0 = arith.constant 0 : index
    %c0_0 = arith.constant 0 : index
    %c0_1 = arith.constant 0 : index
    %0 = vector.load %arg2[%c0, %c0_0, %c0_1] : memref<1x4x128xf32, #tpu.memory_space<vmem>>, vector<1x4x128xf32>
    %1 = vector.shape_cast %0 : vector<1x4x128xf32> to vector<4x128xf32>
    %cst = arith.constant dense<0.000000e+00> : vector<4xf32>
    %2 = vector.multi_reduction <add>, %1, %cst [1] : vector<4x128xf32> to vector<4xf32>
    %3 = vector.shape_cast %2 : vector<4xf32> to vector<4x1xf32>
    %c0_2 = arith.constant 0 : index
    %c0_3 = arith.constant 0 : index
    %c0_4 = arith.constant 0 : index
    %c0_5 = arith.constant 0 : index
    %4 = vector.load %arg3[%c0_2, %c0_3, %c0_4, %c0_5] : memref<1x1x4x1xf32, #tpu.memory_space<vmem>>, vector<1x1x4x1xf32>
    %5 = vector.shape_cast %4 : vector<1x1x4x1xf32> to vector<4x1xf32>
    %6 = vector.shape_cast %3 : vector<4x1xf32> to vector<1x1x4x1xf32>
    tpu.vector_store %arg3[%c0_2, %c0_3, %c0_4, %c0_5], %6 {strides = array<i32>} : memref<1x1x4x1xf32, #tpu.memory_space<vmem>>, vector<1x1x4x1xf32>,
    return
  }
  func.func @transform_0(%arg0: i32, %arg1: i32) -> (i32, i32, i32) {
    %c0_i32 = arith.constant 0 : i32
    %c0_i32_0 = arith.constant 0 : i32
    return %arg0, %c0_i32, %arg1 : i32, i32, i32
  }
  func.func @transform_1(%arg0: i32, %arg1: i32) -> (i32, i32, i32, i32) {
    %c0_i32 = arith.constant 0 : i32
    %c0_i32_0 = arith.constant 0 : i32
    %c0_i32_1 = arith.constant 0 : i32
    return %arg0, %arg1, %c0_i32, %c0_i32_0 : i32, i32, i32, i32
  }
}

module attributes {stable_mosaic.version = 11 : i64} {
  func.func @_gate_kernel(%arg0: i32, %arg1: i32, %arg2: memref<1x4x128xf32, #tpu.memory_space<vmem>>, %arg3: memref<8x4xf32, #tpu.memory_space<vmem>>, %arg4: memref<8x1xf32, #tpu.memory_space<vmem>>, %arg5: memref<4x8xf32, #tpu.memory_space<vmem>>, %arg6: memref<4x1xf32, #tpu.memory_space<vmem>>, %arg7: memref<1x4x1xf32, #tpu.memory_space<vmem>>, %arg8: memref<1x4x128xf32, #tpu.memory_space<vmem>>) attributes {dimension_semantics = [#tpu.dimension_semantics<parallel>, #tpu.dimension_semantics<parallel>], iteration_bounds = array<i64: 2, 2>, scalar_prefetch = 0 : i64, scratch_operands = 0 : i64, tpu.core_type = #tpu.core_type<tc>, window_params = [{transform_indices = @transform_0, window_bounds = array<i64: 1, 4, 128>}, {pipeline_mode = #tpu.pipeline_mode<synchronous>, transform_indices = @transform_1, window_bounds = array<i64: 8, 4>}, {pipeline_mode = #tpu.pipeline_mode<synchronous>, transform_indices = @transform_2, window_bounds = array<i64: 8, 1>}, {pipeline_mode = #tpu.pipeline_mode<synchronous>, transform_indices = @transform_3, window_bounds = array<i64: 4, 8>}, {pipeline_mode = #tpu.pipeline_mode<synchronous>, transform_indices = @transform_4, window_bounds = array<i64: 4, 1>}, {transform_indices = @transform_5, window_bounds = array<i64: 1, 4, 1>}, {transform_indices = @transform_6, window_bounds = array<i64: 1, 4, 128>}]} {
    %c0 = arith.constant 0 : index
    %c0_0 = arith.constant 0 : index
    %c0_1 = arith.constant 0 : index
    %0 = vector.load %arg2[%c0, %c0_0, %c0_1] : memref<1x4x128xf32, #tpu.memory_space<vmem>>, vector<1x4x128xf32>
    %1 = vector.shape_cast %0 : vector<1x4x128xf32> to vector<4x128xf32>
    %c0_2 = arith.constant 0 : index
    %c0_3 = arith.constant 0 : index
    %2 = vector.load %arg3[%c0_2, %c0_3] : memref<8x4xf32, #tpu.memory_space<vmem>>, vector<8x4xf32>
    %cst = arith.constant dense<0.000000e+00> : vector<8x128xf32>
    %3 = tpu.matmul %2, %1, %cst {dimension_numbers = #tpu.dot_dimension_numbers<[1], [0], [0], [1], [0, 0, 1, 1], [], []>} : vector<8x4xf32>, vector<4x128xf32>, vector<8x128xf32> -> vector<8x128xf32>
    %c0_4 = arith.constant 0 : index
    %c0_5 = arith.constant 0 : index
    %4 = vector.load %arg4[%c0_4, %c0_5] : memref<8x1xf32, #tpu.memory_space<vmem>>, vector<8x1xf32>
    %5 = vector.broadcast %4 : vector<8x1xf32> to vector<8x128xf32>
    %6 = arith.addf %3, %5 : vector<8x128xf32>
    %cst_6 = arith.constant 0.000000e+00 : f32
    %7 = vector.broadcast %cst_6 : f32 to vector<8x128xf32>
    %8 = arith.maximumf %6, %7 : vector<8x128xf32>
    %c0_7 = arith.constant 0 : index
    %c0_8 = arith.constant 0 : index
    %9 = vector.load %arg5[%c0_7, %c0_8] : memref<4x8xf32, #tpu.memory_space<vmem>>, vector<4x8xf32>
    %cst_9 = arith.constant dense<0.000000e+00> : vector<4x128xf32>
    %10 = tpu.matmul %9, %8, %cst_9 {dimension_numbers = #tpu.dot_dimension_numbers<[1], [0], [0], [1], [0, 0, 1, 1], [], []>} : vector<4x8xf32>, vector<8x128xf32>, vector<4x128xf32> -> vector<4x128xf32>
    %c0_10 = arith.constant 0 : index
    %c0_11 = arith.constant 0 : index
    %11 = vector.load %arg6[%c0_10, %c0_11] : memref<4x1xf32, #tpu.memory_space<vmem>>, vector<4x1xf32>
    %12 = vector.broadcast %11 : vector<4x1xf32> to vector<4x128xf32>
    %13 = arith.addf %10, %12 : vector<4x128xf32>
    %c0_12 = arith.constant 0 : index
    %c0_13 = arith.constant 0 : index
    %c0_14 = arith.constant 0 : index
    %14 = vector.load %arg7[%c0_12, %c0_13, %c0_14] : memref<1x4x1xf32, #tpu.memory_space<vmem>>, vector<1x4x1xf32>
    %15 = vector.shape_cast %14 : vector<1x4x1xf32> to vector<4x1xf32>
    %16 = vector.broadcast %15 : vector<4x1xf32> to vector<4x128xf32>
    %17 = arith.addf %13, %16 : vector<4x128xf32>
    %18 = arith.negf %17 : vector<4x128xf32>
    %19 = math.exp %18 : vector<4x128xf32>
    %cst_15 = arith.constant 1.000000e+00 : f32
    %20 = vector.broadcast %cst_15 : f32 to vector<4x128xf32>
    %21 = arith.addf %20, %19 : vector<4x128xf32>
    %22 = arith.divf %20, %21 : vector<4x128xf32>
    %23 = arith.mulf %1, %22 : vector<4x128xf32>
    %c0_16 = arith.constant 0 : index
    %c0_17 = arith.constant 0 : index
    %c0_18 = arith.constant 0 : index
    %24 = vector.load %arg8[%c0_16, %c0_17, %c0_18] : memref<1x4x128xf32, #tpu.memory_space<vmem>>, vector<1x4x128xf32>
    %25 = vector.shape_cast %24 : vector<1x4x128xf32> to vector<4x128xf32>
    %26 = vector.shape_cast %23 : vector<4x128xf32> to vector<1x4x128xf32>
    tpu.vector_store %arg8[%c0_16, %c0_17, %c0_18], %26 {strides = array<i32>} : memref<1x4x128xf32, #tpu.memory_space<vmem>>, vector<1x4x128xf32>,
    return
  }
  func.func @transform_0(%arg0: i32, %arg1: i32) -> (i32, i32, i32) {
    %c0_i32 = arith.constant 0 : i32
    %c0_i32_0 = arith.constant 0 : i32
    return %arg0, %c0_i32, %arg1 : i32, i32, i32
  }
  func.func @transform_1(%arg0: i32, %arg1: i32) -> (i32, i32) {
    %c0_i32 = arith.constant 0 : i32
    %c0_i32_0 = arith.constant 0 : i32
    %c0_i32_1 = arith.constant 0 : i32
    return %c0_i32, %c0_i32_0 : i32, i32
  }
  func.func @transform_2(%arg0: i32, %arg1: i32) -> (i32, i32) {
    %c0_i32 = arith.constant 0 : i32
    %c0_i32_0 = arith.constant 0 : i32
    %c0_i32_1 = arith.constant 0 : i32
    return %c0_i32, %c0_i32_0 : i32, i32
  }
  func.func @transform_3(%arg0: i32, %arg1: i32) -> (i32, i32) {
    %c0_i32 = arith.constant 0 : i32
    %c0_i32_0 = arith.constant 0 : i32
    %c0_i32_1 = arith.constant 0 : i32
    return %c0_i32, %c0_i32_0 : i32, i32
  }
  func.func @transform_4(%arg0: i32, %arg1: i32) -> (i32, i32) {
    %c0_i32 = arith.constant 0 : i32
    %c0_i32_0 = arith.constant 0 : i32
    %c0_i32_1 = arith.constant 0 : i32
    return %c0_i32, %c0_i32_0 : i32, i32
  }
  func.func @transform_5(%arg0: i32, %arg1: i32) -> (i32, i32, i32) {
    %c0_i32 = arith.constant 0 : i32
    %c0_i32_0 = arith.constant 0 : i32
    %c0_i32_1 = arith.constant 0 : i32
    return %arg0, %c0_i32, %c0_i32_0 : i32, i32, i32
  }
  func.func @transform_6(%arg0: i32, %arg1: i32) -> (i32, i32, i32) {
    %c0_i32 = arith.constant 0 : i32
    %c0_i32_0 = arith.constant 0 : i32
    return %arg0, %c0_i32, %arg1 : i32, i32, i32
  }
}

</mosaic_0001>

<bundles_post_ra>
// kernel: ms_cam_forward.2
= control target key start
LH: loop header
LB: loop body
LE: loop exit
PB: predicated region body
PF: predicated region fallthrough
CT: control target
= control target key end

     0   :  { %s342_s6 = smov 0   ;;  %s344_s7 = smov 0   ;;  %s387_s0 = inlined_call_operand.vmem [shape: f32[2,4,256], index: 0, kind: input, shape index: {}]   ;;  %s388_s1 = inlined_call_operand.vmem [shape: f32[2,2,4,1], index: 1, kind: output, shape index: {}]  }
   0x1   :  { %s346_s8 = smov 0   ;;  %s348_s9 = smov 0  }
   0x2   :  { %s350_s10 = smov 0  }
   0x3 LB: > { %s20_s11 = sadd.s32 1, %s322_s8  ;;  %s23_s12 = sadd.s32 1, %s326_s9  ;;  %s330_s10 = sphi %s350_s10, %s11_s10   ;;  %s326_s9 = sphi %s348_s9, %s392_s9   ;;  %s322_s8 = sphi %s346_s8, %s391_s8   ;;  %s318_s7 = sphi %s344_s7, %s390_s7   ;;  %s314_s6 = sphi %s342_s6, %s389_s6  }
   0x4   : > { %p21_p0 = scmp.ge.s32.totalorder %s20_s11, 2  ;;  %p245_p1 = scmp.ge.s32.totalorder %s330_s10, 1 }
   0x5   : > { %p106_p2 = scmp.lt.s32.totalorder %s330_s10, 5 }
   0x6   : > { %s394_s11 = smov (%p21_p0, %s20_s11), 0  ;;  %s396_s12 = smov (!%p21_p0, %s23_s12), %s326_s9 }
   0x7   : > { %p107_p3 = pnand %p245_p1, %p106_p2  ;;  %p25_p4 = scmp.ge.s32.totalorder %s396_s12, 2 }
   0x8   : > { %p132_p5 = scmp.lt.s32.totalorder (!%p107_p3), %s318_s7, 1  ;;  %p134_p6 = scmp.lt.s32.totalorder (!%p107_p3), %s314_s6, 1  ;;  %vm149_vm0 = vcmask (!%p107_p3), 1043456   ;;  %vm153_vm1 = vcmask (!%p107_p3), 3072  }
   0x9   : > { %s398_s12 = smov (%p25_p4, %s396_s12), 0  ;;  %110 = sbr.rel (%p107_p3) target bundleno = 166 (0xa6), region = 24 }
  0x10   : > { %s400_s7 = smov (!%p132_p5, %s318_s7), 1  ;;  %s402_s6 = smov (!%p134_p6, %s314_s6), 1 }
  0x11   : > { %s246_s13 = sshll.u32 %s400_s7, 1 }
  0x12   : > { %s137_s14 = sadd.s32 %s246_s13, %s402_s6 }
  0x13   : > { %s247_s15 = sshll.u32 %s137_s14, 2 }
  0x14   : > { %s139_s18 = scalar_lea.vmem %s387_s0, %s247_s15  ;;  %s147_s21 = scalar_lea.vmem %s388_s1, %s247_s15 }
  0x15   : > { %v148_v0 = vld [vmem:[%s139_s18] sm:$0xf] }
  0x16   : > { %v150_v1 = vsel %vm149_vm0, %v148_v0, 0.0 }
  0x17   : > { %151 = vadd.xlane.f32.xlu0 %v150_v1 }
  0xa4   : > { %v152_v2 = vpop.xlane.xlu0 %151 }
  0xa5   : > { %154 = vst.msk [vmem:[%s147_s21] sm:$0xf] %vm153_vm1, %v152_v2 }
  0xa6 PF: > { %s11_s10 = sadd.s32 1, %s330_s10   ;;  %s389_s6 = smov %s322_s8 }
  0xa7   : > { %p8_p7 = scmp.ge.s32.totalorder %s11_s10, 6   ;;  %s390_s7 = smov %s326_s9 }
  0xa8   : > { %s391_s8 = smov %s394_s11  ;;  %s392_s9 = smov %s398_s12 }
  0xa9   :  { %10 = sbr.rel (!%p8_p7) target bundleno = 3 (0x3), region = 54 }

// kernel: ms_cam_forward.3
= control target key start
LH: loop header
LB: loop body
LE: loop exit
PB: predicated region body
PF: predicated region fallthrough
CT: control target
= control target key end

     0   :  { %s738_s21 = smov 0   ;;  %s740_s22 = smov 0   ;;  %s811_s0 = inlined_call_operand.vmem [shape: f32[2,4,256], index: 0, kind: input, shape index: {}, may-alias: {0,6}]   ;;  %s812_s1 = inlined_call_operand.vmem [shape: f32[8,4], index: 1, kind: input, shape index: {}]   ;;  %s813_s2 = inlined_call_operand.vmem [shape: f32[8,1], index: 2, kind: input, shape index: {}]   ;;  %s814_s3 = inlined_call_operand.vmem [shape: f32[4,8], index: 3, kind: input, shape index: {}]   ;;  %s815_s4 = inlined_call_operand.vmem [shape: f32[4,1], index: 4, kind: input, shape index: {}]   ;;  %s816_s5 = inlined_call_operand.vmem [shape: f32[2,4,1], index: 5, kind: input, shape index: {}]   ;;  %s817_s6 = inlined_call_operand.vmem [shape: f32[2,4,256], index: 6, kind: output, shape index: {}, may-alias: {0,6}]  }
   0x1   :  { %s742_s23 = smov 0   ;;  %s744_s24 = smov 0  }
   0x2   :  { %s746_s25 = smov 0  }
   0x3 LB: > { %s25_s26 = sadd.s32 1, %s690_s23  ;;  %s28_s27 = sadd.s32 1, %s694_s24  ;;  %s698_s25 = sphi %s746_s25, %s16_s25   ;;  %s694_s24 = sphi %s744_s24, %s821_s24   ;;  %s690_s23 = sphi %s742_s23, %s820_s23   ;;  %s686_s22 = sphi %s740_s22, %s819_s22   ;;  %s682_s21 = sphi %s738_s21, %s818_s21  }
   0x4   : > { %p26_p0 = scmp.ge.s32.totalorder %s25_s26, 2  ;;  %p585_p1 = scmp.ge.s32.totalorder %s698_s25, 1 }
   0x5   : > { %p240_p2 = scmp.lt.s32.totalorder %s698_s25, 5 }
   0x6   : > { %s823_s26 = smov (%p26_p0, %s25_s26), 0  ;;  %s825_s27 = smov (!%p26_p0, %s28_s27), %s694_s24 }
   0x7   : > { %p241_p3 = pnand %p585_p1, %p240_p2  ;;  %p30_p4 = scmp.ge.s32.totalorder %s825_s27, 2 }
   0x8   : > { %p280_p5 = scmp.lt.s32.totalorder (!%p241_p3), %s686_s22, 1  ;;  %p282_p6 = scmp.lt.s32.totalorder (!%p241_p3), %s682_s21, 1  ;;  %v700_v0 = vmov (!%p241_p3), 0.0   ;;  %vm701_vm0 = vmmov (!%p241_p3), 0   ;;  %v302_v1 = vld [vmem:[%s813_s2] sm:$0xff] (!%p241_p3)  ;;  %v702_v2 = vmov (!%p241_p3), 0  }
   0x9   : > { %s827_s27 = smov (%p30_p4, %s825_s27), 0  ;;  %244 = sbr.rel (%p241_p3) target bundleno = 485 (0x1e5), region = 44 }
   0xa   : > { %601 = vmatprep.subr.mxu0 (!%p241_p3), %v700_v0  ;;  %603 = vmatprep.mubr.msk.f32.mxu0 (!%p241_p3), %vm701_vm0, %v700_v0  ;;  %v388_v3 = vld [vmem:[%s815_s4] sm:$0xf] (!%p241_p3)  ;;  %vm312_vm1 = vcmask (!%p241_p3), 1043456   ;;  %vm308_vm2 = vcmask (!%p241_p3), 31744   ;;  %vm394_vm3 = vcmask (!%p241_p3), 64512  }
   0xb   : > { %654 = vset.pattern.permute.xlu0 (!%p241_p3), %v702_v2  ;;  %606 = vmatprep.subr.mxu1 (!%p241_p3), %v700_v0  ;;  %v301_v4 = vld [vmem:[%s812_s1] sm:$0xff] (!%p241_p3) }
   0xc   : > { %305 = vperm.xlu0 (!%p241_p3), %654, %v302_v1   ;;  %608 = vmatprep.mubr.msk.f32.mxu1 (!%p241_p3), %vm701_vm0, %v700_v0  ;;  %v387_v12 = vld [vmem:[%s814_s3] sm:$0xf] (!%p241_p3) }
   0xd   : > { %655 = vset.pattern.permute.xlu1 (!%p241_p3), %v702_v2 }
  0x10   : > { %s829_s22 = smov (!%p280_p5, %s686_s22), 1  ;;  %s831_s21 = smov (!%p282_p6, %s682_s21), 1  ;;  %391 = vperm.xlu0 %654, %v388_v3  }
  0x11   : > { %s586_s30 = sshll.u32 %s829_s22, 1  ;;  %s588_s16 = sshll.u32 %s829_s22, 2 }
  0x12   : > { %s774_s9 = sadd.s32 %s586_s30, %s831_s21  ;;  %s291_s19 = scalar_lea.vmem %s816_s5, %s588_s16 }
  0x13   : > { %s587_s10 = sshll.u32 %s774_s9, 2  ;;  %v468_v6 = vld [vmem:[%s291_s19] sm:$0xf] }
  0x14   : > { %s287_s13 = scalar_lea.vmem %s811_s0, %s587_s10  ;;  %471 = vperm.xlu1 %655, %v468_v6   ;;  %s299_s29 = scalar_lea.vmem %s817_s6, %s587_s10 }
  0x15   : > { %v300_v5 = vld [vmem:[%s287_s13] sm:$0xf] }
  0x16   : > { %602 = vmatpush3.msk.msra.mxu0 %vm312_vm1, %v300_v5 }
  0x17   : > { %604 = vmatmul.mubr.msk.f32.vlgmr.msra.gmra.mrb[0].mxu0 %vm308_vm2, %v301_v4 }
  0x8b   : > { %v306_v7 = vpop.permute.xlu0 %305 }
  0x8f   : > { %v392_v13 = vpop.permute.xlu0 %391 }
  0x93   : > { %v472_v15 = vpop.permute.xlu1 %471 }
  0xea   : > { %v382_v8 = vpop.f32.mrb[0].mxu0 }
  0xeb   : > { %v383_v9 = vadd.f32 %v382_v8, %v306_v7  ;;  %v605_v10 = vpop.f32.mrb[1].mxu0 }
  0xed   : > { %v386_v11 = vmax.f32 %v383_v9, 0.0 }
  0xef   : > { %607 = vmatpush3.msra.mxu1 %v386_v11 }
  0xf0   : > { %609 = vmatmul.mubr.msk.f32.vlgmr.msra.gmra.mrb[0].mxu1 %vm394_vm3, %v387_v12 }
 0x1c3   : > { %v464_v14 = vpop.f32.mrb[0].mxu1 }
 0x1c4   : > { %v465_v16 = vadd.f32 %v464_v14, %v392_v13  ;;  %v610_v17 = vpop.f32.mrb[1].mxu1 }
 0x1c6   : > { %v474_v18 = vadd.f32 %v472_v15, %v465_v16 }
 0x1c8   : > { %v594_v19 = vmul.f32 -1.442695, %v474_v18 }
 0x1ca   : > { %656 = vpow2.f32 %v594_v19 }
 0x1d4   : > { %v657_v20 = vpop.eup %656 }
 0x1d5   : > { %v478_v21 = vadd.f32 1.0, %v657_v20 }
 0x1d7   : > { %658 = vrcp.f32 %v478_v21 }
 0x1e1   : > { %v659_v22 = vpop.eup %658 }
 0x1e2   : > { %v481_v23 = vmul.f32 %v659_v22, %v300_v5 }
 0x1e4   : > { %482 = vst [vmem:[%s299_s29] sm:$0xf] %v481_v23 }
 0x1e5 PF: > { %s16_s25 = sadd.s32 1, %s698_s25   ;;  %s818_s21 = smov %s690_s23 }
 0x1e6   : > { %p13_p7 = scmp.ge.s32.totalorder %s16_s25, 6   ;;  %s819_s22 = smov %s694_s24 }
 0x1e7   : > { %s820_s23 = smov %s823_s26  ;;  %s821_s24 = smov %s827_s27 }
 0x1e8   :  { %15 = sbr.rel (!%p13_p7) target bundleno = 3 (0x3), region = 77 }

</bundles_post_ra>
